<compile_context>
chip_gen: v5e
topology: v5e:2x2
jax: 0.10.0
libtpu: 0.0.40
codegen_flags: <defaults>
</compile_context>

<pallas_src>
import functools

import jax
import jax.numpy as jnp
from jax.experimental import pallas as pl
from jax.experimental.pallas import tpu as pltpu

_MAX_TB = 512   # max batch-row tile (~0.5 MiB double-buffered x/out at 128 lanes)
_MIN_TB = 16    # bf16 sublane packing granule


def _round_up(n, m):
    return ((n + m - 1) // m) * m


def _pick_tile(batch):
    """Row tile: as large as possible, but keep multiple grid steps for big
    batches so v7x megacore sharding has work for both TensorCores."""
    b = _round_up(max(batch, 1), _MIN_TB)
    tb = _round_up(pl.cdiv(b, 8), _MIN_TB)       # aim for ~8 grid steps
    return max(_MIN_TB, min(_MAX_TB, tb))


def _a2c_kernel(x_ref, wih_ref, bias_ref, whead_ref, out_ref, *, a_dim, inv_beta):
    # ---- hidden layer: h = leaky_relu(x @ W_ih + b_ih) ----
    h = jnp.dot(x_ref[...], wih_ref[...],
                preferred_element_type=jnp.float32) + bias_ref[0:1, :]   # (TB, P)
    h = jnp.maximum(h, 0.01 * h)                                         # leaky_relu

    # ---- fused actor+critic head: y[:, :A] = actor logits, y[:, A] = value ----
    y = jnp.dot(h.astype(whead_ref.dtype), whead_ref[...],
                preferred_element_type=jnp.float32) + bias_ref[1:2, :]   # (TB, P)

    lane = jax.lax.broadcasted_iota(jnp.int32, y.shape, 1)
    valid = lane < a_dim                                                 # actor lanes

    # ---- softmax(logits / beta) over the action lanes only ----
    scaled = y * inv_beta
    masked = jnp.where(valid, scaled, jnp.float32(-1e30))
    m = jnp.max(masked, axis=-1, keepdims=True)
    e = jnp.exp(masked - m)                      # padded lanes underflow to exactly 0
    s = jnp.sum(e, axis=-1, keepdims=True)
    p = e * (1.0 / s)                            # exact reciprocal -> sum(pi) == 1

    # ---- entropy via log-sum-exp of the shifted logits (no log(0)/NaN) ----
    shifted = jnp.where(valid, scaled - m, 0.0)
    ent = jnp.log(s) - jnp.sum(p * shifted, axis=-1, keepdims=True)      # (TB, 1)

    # ---- single lane-dense output: [pi_0..pi_{A-1}, v, ent, 0, ...] ----
    out_ref[...] = jnp.where(lane == a_dim, y,
                   jnp.where(lane == a_dim + 1, ent, p))


def pack_params(params):
    """One-time host-side packing into lane-aligned buffers (weights in bf16)."""
    D, H = params["W_ih"].shape
    A = params["W_a"].shape[1]
    p_pad = _round_up(max(H, A + 2), 128)

    w_ih = jnp.zeros((D, p_pad), jnp.float32)
    w_ih = w_ih.at[:, :H].set(params["W_ih"].astype(jnp.float32))

    w_head = jnp.zeros((p_pad, p_pad), jnp.float32)
    w_head = w_head.at[:H, :A].set(params["W_a"].astype(jnp.float32))
    w_head = w_head.at[:H, A:A + 1].set(params["W_c"].astype(jnp.float32))

    bias = jnp.zeros((2, p_pad), jnp.float32)
    bias = bias.at[0, :H].set(params["b_ih"].astype(jnp.float32))
    bias = bias.at[1, :A].set(params["b_a"].astype(jnp.float32))
    bias = bias.at[1, A].set(params["b_c"].astype(jnp.float32)[0])

    return {"W_ih": w_ih.astype(jnp.bfloat16),
            "W_head": w_head.astype(jnp.bfloat16),
            "bias": bias,
            "dims": (D, H, A),
            "p_pad": p_pad}


def a2c_forward(x, packed, beta=1.0):
    """A2C forward pass.

    x      : (D,) single state (PyTorch-module semantics) or (B, D) batch.
    packed : output of pack_params (packed once, reused every call).
    returns: (pi, value, entropy) — shapes (A,), (1,), () for a single state,
             (B, A), (B, 1), (B,) for a batch.
    """
    assert beta > 0
    D, H, A = packed["dims"]
    p_pad = packed["p_pad"]

    x = jnp.asarray(x, jnp.float32)
    single = (x.ndim == 1)
    x2 = x[None, :] if single else x
    B = x2.shape[0]

    tb = _pick_tile(B)
    b_pad = _round_up(B, tb)

    xb = x2.astype(jnp.bfloat16)                 # MXU-native input dtype
    if b_pad != B:
        xb = jnp.pad(xb, ((0, b_pad - B), (0, 0)))   # batch-dim pad only

    kernel = functools.partial(_a2c_kernel, a_dim=A, inv_beta=float(1.0 / beta))

    out = pl.pallas_call(
        kernel,
        out_shape=jax.ShapeDtypeStruct((b_pad, p_pad), jnp.float32),
        grid=(b_pad // tb,),
        in_specs=[
            pl.BlockSpec((tb, D), lambda i: (i, 0)),          # state rows (tiled)
            pl.BlockSpec((D, p_pad), lambda i: (0, 0)),       # W_ih (resident)
            pl.BlockSpec((2, p_pad), lambda i: (0, 0)),       # biases (resident)
            pl.BlockSpec((p_pad, p_pad), lambda i: (0, 0)),   # fused actor+critic head
        ],
        out_specs=pl.BlockSpec((tb, p_pad), lambda i: (i, 0)),
        compiler_params=pltpu.CompilerParams(
            dimension_semantics=("parallel",)),
    )(xb, packed["W_ih"], packed["bias"], packed["W_head"])

    pi = out[:B, :A]
    v = out[:B, A:A + 1]
    ent = out[:B, A + 1]
    if single:
        return pi[0], v[0], ent[0]
    return pi, v, ent


def init_params(key, dim_input, dim_hidden, dim_output):
    """Deterministic PyTorch-Linear-style init (uniform(-1/sqrt(fan_in), +))."""
    ks = jax.random.split(key, 6)

    def lin(kw, kb, fan_in, fan_out):
        bound = 1.0 / jnp.sqrt(jnp.float32(fan_in))
        w = jax.random.uniform(kw, (fan_in, fan_out), jnp.float32, -bound, bound)
        b = jax.random.uniform(kb, (fan_out,), jnp.float32, -bound, bound)
        return w, b

    W_ih, b_ih = lin(ks[0], ks[1], dim_input, dim_hidden)
    W_a, b_a = lin(ks[2], ks[3], dim_hidden, dim_output)
    W_c, b_c = lin(ks[4], ks[5], dim_hidden, 1)
    return {"W_ih": W_ih, "b_ih": b_ih, "W_a": W_a, "b_a": b_a,
            "W_c": W_c, "b_c": b_c}


def _ref_forward(x, params, beta):
    h = x @ params["W_ih"] + params["b_ih"]
    h = jnp.where(h > 0, h, 0.01 * h)
    v = h @ params["W_c"] + params["b_c"]
    logits = (h @ params["W_a"] + params["b_a"]) / beta
    p = jax.nn.softmax(logits, axis=-1)
    ent = -jnp.sum(p * jnp.log(p), axis=-1)
    return p, v, ent


if __name__ == "__main__":
    dim_input, dim_hidden, dim_output = 16, 32, 8
    key = jax.random.PRNGKey(0)
    k_param, k_x, k_xb = jax.random.split(key, 3)

    params = init_params(k_param, dim_input, dim_hidden, dim_output)
    packed = pack_params(params)

    # bf16 matmul inputs -> loosen tolerances vs. the f32 reference (review note).
    TOL = 2e-2

    # ---- single-state forward (matches the PyTorch module's API) ----
    x = jax.random.normal(k_x, (dim_input,), jnp.float32)
    pi, value, entropy = a2c_forward(x, packed, beta=1.0)
    jax.block_until_ready((pi, value, entropy))

    p_ref, v_ref, e_ref = _ref_forward(x, params, 1.0)
    assert pi.shape == (dim_output,)
    assert value.shape == (1,)
    assert entropy.shape == ()
    assert jnp.allclose(jnp.sum(pi), 1.0, atol=1e-4)          # exact-division softmax
    assert jnp.allclose(pi, p_ref, atol=TOL)
    assert jnp.allclose(value, v_ref, atol=TOL)
    assert jnp.allclose(entropy, e_ref, atol=TOL)

    # ---- batched forward: many states in one launch (amortizes overhead) ----
    xb = jax.random.normal(k_xb, (16, dim_input), jnp.float32)
    pib, vb, entb = a2c_forward(xb, packed, beta=0.5)
    jax.block_until_ready((pib, vb, entb))
    pb_ref, vb_ref, eb_ref = _ref_forward(xb, params, 0.5)
    assert jnp.allclose(jnp.sum(pib, axis=-1), 1.0, atol=1e-4)
    assert jnp.allclose(pib, pb_ref, atol=TOL)
    assert jnp.allclose(vb, vb_ref, atol=TOL)
    assert jnp.allclose(entb, eb_ref, atol=TOL)

    print("KERNEL_OK")
</pallas_src>

<mosaic_0001>
module attributes {stable_mosaic.version = 11 : i64} {
  func.func @_a2c_kernel(%arg0: i32, %arg1: memref<16x16xbf16, #tpu.memory_space<vmem>>, %arg2: memref<16x128xbf16, #tpu.memory_space<vmem>>, %arg3: memref<2x128xf32, #tpu.memory_space<vmem>>, %arg4: memref<128x128xbf16, #tpu.memory_space<vmem>>, %arg5: memref<16x128xf32, #tpu.memory_space<vmem>>) attributes {dimension_semantics = [#tpu.dimension_semantics<parallel>], iteration_bounds = array<i64: 1>, scalar_prefetch = 0 : i64, scratch_operands = 0 : i64, tpu.core_type = #tpu.core_type<tc>, window_params = [{transform_indices = @transform_0, window_bounds = array<i64: 16, 16>}, {pipeline_mode = #tpu.pipeline_mode<synchronous>, transform_indices = @transform_1, window_bounds = array<i64: 16, 128>}, {pipeline_mode = #tpu.pipeline_mode<synchronous>, transform_indices = @transform_2, window_bounds = array<i64: 2, 128>}, {pipeline_mode = #tpu.pipeline_mode<synchronous>, transform_indices = @transform_3, window_bounds = array<i64: 128, 128>}, {transform_indices = @transform_4, window_bounds = array<i64: 16, 128>}]} {
    %c0 = arith.constant 0 : index
    %c0_0 = arith.constant 0 : index
    %0 = vector.load %arg1[%c0, %c0_0] : memref<16x16xbf16, #tpu.memory_space<vmem>>, vector<16x16xbf16>
    %c0_1 = arith.constant 0 : index
    %c0_2 = arith.constant 0 : index
    %1 = vector.load %arg2[%c0_1, %c0_2] : memref<16x128xbf16, #tpu.memory_space<vmem>>, vector<16x128xbf16>
    %cst = arith.constant dense<0.000000e+00> : vector<16x128xf32>
    %2 = tpu.matmul %0, %1, %cst {dimension_numbers = #tpu.dot_dimension_numbers<[1], [0], [0], [1], [0, 0, 1, 1], [], []>} : vector<16x16xbf16>, vector<16x128xbf16>, vector<16x128xf32> -> vector<16x128xf32>
    %c0_3 = arith.constant 0 : index
    %c0_4 = arith.constant 0 : index
    %3 = vector.load %arg3[%c0_3, %c0_4] : memref<2x128xf32, #tpu.memory_space<vmem>>, vector<1x128xf32>
    %4 = vector.broadcast %3 : vector<1x128xf32> to vector<16x128xf32>
    %5 = arith.addf %2, %4 : vector<16x128xf32>
    %cst_5 = arith.constant 0.00999999977 : f32
    %6 = vector.broadcast %cst_5 : f32 to vector<16x128xf32>
    %7 = arith.mulf %6, %5 : vector<16x128xf32>
    %8 = arith.maximumf %5, %7 : vector<16x128xf32>
    %9 = arith.truncf %8 : vector<16x128xf32> to vector<16x128xbf16>
    %c0_6 = arith.constant 0 : index
    %c0_7 = arith.constant 0 : index
    %10 = vector.load %arg4[%c0_6, %c0_7] : memref<128x128xbf16, #tpu.memory_space<vmem>>, vector<128x128xbf16>
    %cst_8 = arith.constant dense<0.000000e+00> : vector<16x128xf32>
    %11 = tpu.matmul %9, %10, %cst_8 {dimension_numbers = #tpu.dot_dimension_numbers<[1], [0], [0], [1], [0, 0, 1, 1], [], []>} : vector<16x128xbf16>, vector<128x128xbf16>, vector<16x128xf32> -> vector<16x128xf32>
    %c1 = arith.constant 1 : index
    %c0_9 = arith.constant 0 : index
    %12 = vector.load %arg3[%c1, %c0_9] : memref<2x128xf32, #tpu.memory_space<vmem>>, vector<1x128xf32>
    %13 = vector.broadcast %12 : vector<1x128xf32> to vector<16x128xf32>
    %14 = arith.addf %11, %13 : vector<16x128xf32>
    %15 = tpu.iota {dimensions = array<i32: 1>} : vector<16x128xi32>
    %c8_i32 = arith.constant 8 : i32
    %16 = vector.broadcast %c8_i32 : i32 to vector<16x128xi32>
    %17 = arith.cmpi slt, %15, %16 : vector<16x128xi32>
    %cst_10 = arith.constant 1.000000e+00 : f32
    %18 = vector.broadcast %cst_10 : f32 to vector<16x128xf32>
    %19 = arith.mulf %14, %18 : vector<16x128xf32>
    %cst_11 = arith.constant -1.000000e+30 : f32
    %20 = vector.broadcast %cst_11 : f32 to vector<16x128xf32>
    %21 = arith.select %17, %19, %20 : vector<16x128xi1>, vector<16x128xf32>
    %cst_12 = arith.constant dense<0xFF800000> : vector<16xf32>
    %22 = vector.multi_reduction <maximumf>, %21, %cst_12 [1] : vector<16x128xf32> to vector<16xf32>
    %23 = vector.shape_cast %22 : vector<16xf32> to vector<16x1xf32>
    %24 = vector.broadcast %23 : vector<16x1xf32> to vector<16x128xf32>
    %25 = arith.subf %21, %24 : vector<16x128xf32>
    %26 = math.exp %25 : vector<16x128xf32>
    %cst_13 = arith.constant dense<0.000000e+00> : vector<16xf32>
    %27 = vector.multi_reduction <add>, %26, %cst_13 [1] : vector<16x128xf32> to vector<16xf32>
    %28 = vector.shape_cast %27 : vector<16xf32> to vector<16x1xf32>
    %cst_14 = arith.constant 1.000000e+00 : f32
    %29 = vector.broadcast %cst_14 : f32 to vector<16x1xf32>
    %30 = arith.divf %29, %28 : vector<16x1xf32>
    %31 = vector.broadcast %30 : vector<16x1xf32> to vector<16x128xf32>
    %32 = arith.mulf %26, %31 : vector<16x128xf32>
    %33 = vector.broadcast %23 : vector<16x1xf32> to vector<16x128xf32>
    %34 = arith.subf %19, %33 : vector<16x128xf32>
    %cst_15 = arith.constant 0.000000e+00 : f32
    %35 = vector.broadcast %cst_15 : f32 to vector<16x128xf32>
    %36 = arith.select %17, %34, %35 : vector<16x128xi1>, vector<16x128xf32>
    %37 = math.log %28 : vector<16x1xf32>
    %38 = arith.mulf %32, %36 : vector<16x128xf32>
    %cst_16 = arith.constant dense<0.000000e+00> : vector<16xf32>
    %39 = vector.multi_reduction <add>, %38, %cst_16 [1] : vector<16x128xf32> to vector<16xf32>
    %40 = vector.shape_cast %39 : vector<16xf32> to vector<16x1xf32>
    %41 = arith.subf %37, %40 : vector<16x1xf32>
    %c8_i32_17 = arith.constant 8 : i32
    %42 = vector.broadcast %c8_i32_17 : i32 to vector<16x128xi32>
    %43 = arith.cmpi eq, %15, %42 : vector<16x128xi32>
    %c9_i32 = arith.constant 9 : i32
    %44 = vector.broadcast %c9_i32 : i32 to vector<16x128xi32>
    %45 = arith.cmpi eq, %15, %44 : vector<16x128xi32>
    %46 = vector.shape_cast %41 : vector<16x1xf32> to vector<16x1xf32>
    %47 = vector.broadcast %46 : vector<16x1xf32> to vector<16x128xf32>
    %48 = arith.select %45, %47, %32 : vector<16x128xi1>, vector<16x128xf32>
    %49 = arith.select %43, %14, %48 : vector<16x128xi1>, vector<16x128xf32>
    %c0_18 = arith.constant 0 : index
    %c0_19 = arith.constant 0 : index
    %50 = vector.load %arg5[%c0_18, %c0_19] : memref<16x128xf32, #tpu.memory_space<vmem>>, vector<16x128xf32>
    tpu.vector_store %arg5[%c0_18, %c0_19], %49 {strides = array<i32>} : memref<16x128xf32, #tpu.memory_space<vmem>>, vector<16x128xf32>,
    return
  }
  func.func @transform_0(%arg0: i32) -> (i32, i32) {
    %c0_i32 = arith.constant 0 : i32
    %c0_i32_0 = arith.constant 0 : i32
    return %arg0, %c0_i32 : i32, i32
  }
  func.func @transform_1(%arg0: i32) -> (i32, i32) {
    %c0_i32 = arith.constant 0 : i32
    %c0_i32_0 = arith.constant 0 : i32
    %c0_i32_1 = arith.constant 0 : i32
    return %c0_i32, %c0_i32_0 : i32, i32
  }
  func.func @transform_2(%arg0: i32) -> (i32, i32) {
    %c0_i32 = arith.constant 0 : i32
    %c0_i32_0 = arith.constant 0 : i32
    %c0_i32_1 = arith.constant 0 : i32
    return %c0_i32, %c0_i32_0 : i32, i32
  }
  func.func @transform_3(%arg0: i32) -> (i32, i32) {
    %c0_i32 = arith.constant 0 : i32
    %c0_i32_0 = arith.constant 0 : i32
    %c0_i32_1 = arith.constant 0 : i32
    return %c0_i32, %c0_i32_0 : i32, i32
  }
  func.func @transform_4(%arg0: i32) -> (i32, i32) {
    %c0_i32 = arith.constant 0 : i32
    %c0_i32_0 = arith.constant 0 : i32
    return %arg0, %c0_i32 : i32, i32
  }
}

</mosaic_0001>

<bundles_post_ra>
// kernel: tpu_custom_call.1
= control target key start
LH: loop header
LB: loop body
LE: loop exit
PB: predicated region body
PF: predicated region fallthrough
CT: control target
= control target key end

     0   :  { %9 = vsyncpa [#allocation3], 0  ;;  %s574_s0 = inlined_call_operand.hbm [shape: bf16[16,16], index: 0, kind: input, shape index: {}]   ;;  %s575_s1 = inlined_call_operand.hbm [shape: bf16[16,128], index: 1, kind: input, shape index: {}]   ;;  %s576_s2 = inlined_call_operand.hbm [shape: f32[2,128], index: 2, kind: input, shape index: {}]   ;;  %s577_s3 = inlined_call_operand.hbm [shape: bf16[128,128], index: 3, kind: input, shape index: {}]   ;;  %s578_s4 = inlined_call_operand.hbm [shape: f32[16,128], index: 4, kind: output, shape index: {}]  }
   0x1   :  { %10 = vsyncpa [#allocation6], 0 }
   0x2   :  { %11 = vsyncpa [#allocation9], 0 }
   0x3   :  { %12 = vsyncpa [#allocation4], 0  ;;  %s30_s17 = sshll.u32 %s575_s1, 4  ;;  %s498_s18 = smov [#allocation5]   ;;  %s31_s17 = int_to_ptr.hbm [resolvable:$true] %s30_s17 }
   0x4   :  { %s32_s19 = sshll.u32 %s498_s18, 4  ;;  %s17_s22 = sshll.u32 %s574_s0, 4  ;;  %s33_s19 = int_to_ptr.vmem [resolvable:$true] %s32_s19  ;;  %s18_s22 = int_to_ptr.hbm [resolvable:$true] %s17_s22 }
   0x5   :  { %s499_s23 = smov 64   ;;  %s500_s24 = smov 4  }
   0x6   :  { %38 = dma.hbm_to_vmem [thread:$0]  %s31_s17, 128, %s33_s19, [#allocation6], %s499_s23, %s499_s23, %s500_s24  }
   0x7   :  { %s501_s25 = smov [#allocation2]   ;;  %s44_s29 = sshll.u32 %s576_s2, 4  ;;  %s45_s29 = int_to_ptr.hbm [resolvable:$true] %s44_s29 }
   0x8   :  { %s19_s26 = sshll.u32 %s501_s25, 4  ;;  %s54_s5 = sshll.u32 %s577_s3, 4  ;;  %s20_s26 = int_to_ptr.vmem [resolvable:$true] %s19_s26  ;;  %s55_s5 = int_to_ptr.hbm [resolvable:$true] %s54_s5 }
   0x9   :  { %25 = dma.hbm_to_vmem [thread:$0]  %s18_s22, 128, %s20_s26, [#allocation3], %s499_s23, %s499_s23, %s500_s24  }
   0xa   :  { %s502_s6 = smov [#allocation7]   ;;  %s503_s0 = smov [#allocation8]  }
   0xb   :  { %s46_s7 = sshll.u32 %s502_s6, 4  ;;  %s56_s8 = sshll.u32 %s503_s0, 4  ;;  %s47_s7 = int_to_ptr.vmem [resolvable:$true] %s46_s7  ;;  %s57_s8 = int_to_ptr.vmem [resolvable:$true] %s56_s8 }
   0xc   :  { %49 = dma.hbm_to_vmem [thread:$0]  %s45_s29, 32, %s47_s7, [#allocation6]  }
   0xd   :  { %62 = dma.hbm_to_vmem [thread:$0]  %s55_s5, 1024, %s57_s8, [#allocation9], %s499_s23, %s499_s23, %s500_s24  }
   0xe   :  { %490 = dma.done.wait [#allocation3], 128  }
   0xf   :  { %491 = vsyncadd [#allocation3], 4294967168 }
  0x10   :  { %492 = dma.done.wait [#allocation6], 160  }
  0x11   :  { %493 = vsyncadd [#allocation6], 4294967136 }
  0x12   :  { %494 = dma.done.wait [#allocation9], 1024  }
  0x13   :  { %495 = vsyncadd [#allocation9], 4294966272  ;;  %v338_v0 = vld [vmem:[#allocation5] sm:$0xff]  ;;  %v337_v2 = vld [vmem:[#allocation2] sm:$0xff]  ;;  %vm97_vm0 = vcmask 130048   ;;  %v200_v20 = vlaneseq  ;;  %s504_s2 = smov [#allocation10]  }
  0x14   :  { %v346_v1 = vld [vmem:[#allocation8 + $0x38] sm:$0xff]  ;;  %108 = vmatpush.bf16.msra.mxu0 %v338_v0  ;;  %v345_v3 = vld [vmem:[#allocation8 + $0x30] sm:$0xff]  ;;  %v344_v4 = vld [vmem:[#allocation8 + $0x28] sm:$0xff]  ;;  %s279_s3 = sshll.u32 %s504_s2, 4  ;;  %s281_s11 = sshll.u32 %s578_s4, 4  ;;  %s280_s3 = int_to_ptr.vmem [resolvable:$true] %s279_s3  ;;  %s282_s11 = int_to_ptr.hbm [resolvable:$true] %s281_s11 }
  0x15   :  { %186 = vmatpush.bf16.msra.mxu1 %v346_v1  ;;  %v343_v5 = vld [vmem:[#allocation8 + $0x20] sm:$0xff]  ;;  %v342_v6 = vld [vmem:[#allocation8 + $0x18] sm:$0xff]  ;;  %v341_v7 = vld [vmem:[#allocation8 + $0x10] sm:$0xff]  ;;  %v544_v21 = vand.u32 127, %v200_v20  ;;  %s505_s12 = smov 128   ;;  %s506_s13 = smov 8  }
  0x16   :  { %v340_v8 = vld [vmem:[#allocation8 + $0x8] sm:$0xff]  ;;  %v339_v9 = vld [vmem:[#allocation8] sm:$0xff]  ;;  %v356_v11 = vld [vmem:[#allocation7] ss:$0 sm:$0xff] }
  0x17   :  { %304 = vmatmul.msk.bf16.vlgmr.msra.gmra.mxu0 %vm97_vm0, %v337_v2  ;;  %v357_v22 = vld [vmem:[#allocation7 + $0x1] ss:$0 sm:$0xff]  ;;  %vm202_vm1 = vcmp.lt.s32.totalorder %v544_v21, 8  ;;  %vm268_vm10 = vcmp.eq.s32.totalorder %v544_v21, 9  ;;  %vm267_vm11 = vcmp.eq.s32.totalorder %v544_v21, 8 }
  0x19   :  { %187 = vmatpush.bf16.msra.mxu1 %v345_v3 }
  0x1d   :  { %188 = vmatpush.bf16.msra.mxu1 %v344_v4 }
  0x21   :  { %189 = vmatpush.bf16.msra.mxu1 %v343_v5 }
  0x25   :  { %190 = vmatpush.bf16.msra.mxu1 %v342_v6 }
  0x29   :  { %191 = vmatpush.bf16.msra.mxu1 %v341_v7 }
  0x2d   :  { %192 = vmatpush.bf16.msra.mxu1 %v340_v8 }
  0x31   :  { %193 = vmatpush.bf16.msra.mxu1 %v339_v9 }
  0x94   :  { %v110_v10 = vpop.f32.mrf.mxu0 }
  0x95   :  { %v111_v12 = vadd.f32 %v356_v11, %v110_v10 }
  0x97   :  { %v115_v14 = vmul.f32 0.01, %v111_v12 }
  0x99   :  { %v117_v17 = vmax.f32 %v111_v12, %v115_v14 }
  0x9c   :  { %v112_v13 = vpop.f32.mrf.mxu0 }
  0x9d   :  { %v113_v15 = vadd.f32 %v356_v11, %v112_v13 }
  0x9f   :  { %v116_v16 = vmul.f32 0.01, %v113_v15 }
  0xa1   :  { %v118_v18 = vmax.f32 %v113_v15, %v116_v16 }
  0xa3   :  { %v119_v19 = vpack.c.bf16 %v118_v18, %v117_v17 }
  0xa5   :  { %194 = vmatmul.bf16.vlgmr.msra.gmra.mxu1 %v119_v19 }
 0x122   :  { %v195_v23 = vpop.f32.mrf.mxu1 }
 0x123   :  { %v547_v24 = vadd.f32 %v357_v22, %v195_v23 }
 0x125   :  { %v203_v25 = vsel %vm202_vm1, %v547_v24, -1e+30 }
 0x126   :  { %205 = vmax.xlane.f32.xlu0 %v203_v25 }
 0x12a   :  { %v197_v26 = vpop.f32.mrf.mxu1 }
 0x12b   :  { %v552_v27 = vadd.f32 %v357_v22, %v197_v26 }
 0x12d   :  { %v204_v28 = vsel %vm202_vm1, %v552_v27, -1e+30 }
 0x12e   :  { %207 = vmax.xlane.f32.xlu0 %v204_v28 }
 0x199   :  { %v206_v29 = vpop.xlane.xlu0 %205 }
 0x19a   :  { %v209_v30 = vsub.f32 %v203_v25, %v206_v29  ;;  %v251_v47 = vsub.f32 %v547_v24, %v206_v29 }
 0x19c   :  { %v211_v31 = vmul.f32 1.442695, %v209_v30  ;;  %v253_v55 = vsel %vm202_vm1, %v251_v47, 0.0 }
 0x19e   :  { %358 = vpow2.f32 %v211_v31 }
 0x1a1   :  { %v208_v32 = vpop.xlane.xlu0 %207 }
 0x1a2   :  { %v210_v33 = vsub.f32 %v204_v28, %v208_v32  ;;  %v252_v60 = vsub.f32 %v552_v27, %v208_v32 }
 0x1a4   :  { %v359_v34 = vpop.eup %358  ;;  %v213_v35 = vmul.f32 1.442695, %v210_v33  ;;  %v254_v1 = vsel %vm202_vm1, %v252_v60, 0.0 }
 0x1a5   :  { %215 = vadd.xlane.f32.xlu1 %v359_v34 }
 0x1a6   :  { %360 = vpow2.f32 %v213_v35 }
 0x1ac   :  { %v361_v36 = vpop.eup %360 }
 0x1ad   :  { %217 = vadd.xlane.f32.xlu1 %v361_v36 }
 0x218   :  { %v216_v37 = vpop.xlane.xlu1 %215 }
 0x219   :  { %362 = vrcp.f32 %v216_v37  ;;  %v230_v42 = vand.u32 2147483648, %v216_v37  ;;  %v228_v44 = vand.u32 2147483647, %v216_v37  ;;  %vm224_vm3 = vweird.f32 %v216_v37 }
 0x21b   :  { %v231_v48 = vor.u32 1.1754944e-38, %v230_v42  ;;  %vm229_vm5 = vcmp.eq.f32.partialorder %v228_v44, 8.507059e+37 }
 0x21f   :  { %v363_v38 = vpop.eup %362 }
 0x220   :  { %v220_v39 = vmul.f32 %v363_v38, %v216_v37  ;;  %v218_v40 = vpop.xlane.xlu1 %217  ;;  %vm225_vm2 = vweird.f32 %v363_v38 }
 0x221   :  { %364 = vrcp.f32 %v218_v40  ;;  %vm226_vm4 = vmor %vm224_vm3, %vm225_vm2  ;;  %v245_v54 = vand.u32 2147483648, %v218_v40  ;;  %v243_v58 = vand.u32 2147483647, %v218_v40  ;;  %vm239_vm7 = vweird.f32 %v218_v40 }
 0x222   :  { %v221_v41 = vsub.f32 1.0, %v220_v39  ;;  %366 = vlog2.f32 %v216_v37 }
 0x223   :  { %v246_v61 = vor.u32 1.1754944e-38, %v245_v54  ;;  %vm244_vm9 = vcmp.eq.f32.partialorder %v243_v58, 8.507059e+37  ;;  %368 = vlog2.f32 %v218_v40 }
 0x224   :  { %v222_v43 = vmul.f32 %v363_v38, %v221_v41 }
 0x226   :  { %v223_v45 = vadd.f32 %v363_v38, %v222_v43 }
 0x227   :  { %v365_v46 = vpop.eup %364 }
 0x228   :  { %v235_v49 = vmul.f32 %v365_v46, %v218_v40  ;;  %v227_v50 = vsel %vm226_vm4, %v363_v38, %v223_v45  ;;  %vm240_vm6 = vweird.f32 %v365_v46  ;;  %v367_v3 = vpop.eup %366 }
 0x229   :  { %v232_v51 = vsel %vm229_vm5, %v231_v48, %v227_v50  ;;  %vm241_vm8 = vmor %vm239_vm7, %vm240_vm6  ;;  %v256_v4 = vmul.f32 0.6931472, %v367_v3  ;;  %v369_v8 = vpop.eup %368 }
 0x22a   :  { %v236_v52 = vsub.f32 1.0, %v235_v49  ;;  %v249_v53 = vmul.f32 %v359_v34, %v232_v51  ;;  %v258_v10 = vmul.f32 0.6931472, %v369_v8 }
 0x22c   :  { %v237_v56 = vmul.f32 %v365_v46, %v236_v52  ;;  %v259_v57 = vmul.f32 %v253_v55, %v249_v53 }
 0x22e   :  { %261 = vadd.xlane.f32.xlu2 %v259_v57  ;;  %v238_v59 = vadd.f32 %v365_v46, %v237_v56 }
 0x230   :  { %v242_v62 = vsel %vm241_vm8, %v365_v46, %v238_v59 }
 0x231   :  { %v247_v63 = vsel %vm244_vm9, %v246_v61, %v242_v62 }
 0x232   :  { %v250_v0 = vmul.f32 %v361_v36, %v247_v63 }
 0x234   :  { %v260_v2 = vmul.f32 %v254_v1, %v250_v0 }
 0x236   :  { %263 = vadd.xlane.f32.xlu2 %v260_v2 }
 0x2a1   :  { %v262_v5 = vpop.xlane.xlu2 %261 }
 0x2a2   :  { %v265_v6 = vsub.f32 %v256_v4, %v262_v5 }
 0x2a4   :  { %v269_v7 = vsel %vm268_vm10, %v265_v6, %v249_v53 }
 0x2a5   :  { %v271_v9 = vsel %vm267_vm11, %v547_v24, %v269_v7 }
 0x2a6   :  { %273 = vst [vmem:[#allocation10] sm:$0xff] %v271_v9 }
 0x2a9   :  { %v264_v11 = vpop.xlane.xlu2 %263 }
 0x2aa   :  { %v266_v12 = vsub.f32 %v258_v10, %v264_v11 }
 0x2ac   :  { %v270_v13 = vsel %vm268_vm10, %v266_v12, %v250_v0 }
 0x2ad   :  { %v272_v14 = vsel %vm267_vm11, %v552_v27, %v270_v13 }
 0x2ae   :  { %274 = vst [vmem:[#allocation10 + $0x8] sm:$0xff] %v272_v14 }
 0x2af   :  { %287 = dma.vmem_to_hbm [thread:$0]  %s280_s3, 256, %s282_s11, [#allocation4], %s505_s12, %s505_s12, %s506_s13  }
 0x2b0   :  { %496 = dma.done.wait [#allocation4], 256  }
 0x2b1   :  { %497 = vsyncadd [#allocation4], 4294967040 }
 0x2b2   :  { %292 = vsyncpa [#allocation3], 1 }
 0x2b3   :  { %293 = vsyncpa [#allocation6], 1 }
 0x2b4   :  { %294 = vsyncpa [#allocation9], 1 }
 0x2b5   :  { %295 = vsyncpa [#allocation4], 1 }

</bundles_post_ra>
